<compile_context>
chip_gen: v5e
topology: v5e:2x2
jax: 0.10.0
libtpu: 0.0.40
codegen_flags: <defaults>
</compile_context>

<pallas_src>
import jax
import jax.numpy as jnp
from jax.experimental import pallas as pl
from jax.experimental.pallas import tpu as pltpu

_MiB = 1 << 20
_RESIDENT_W_CAP = 36 * _MiB      # keep the resident-W path portable to v7x (64 MiB VMEM/TC)
_VMEM_LIMIT_CAP = 64 * _MiB


def _round_up(v, m):
    return (v + m - 1) // m * m


# ---------------------------------------------------------------------------
# Kernel 1: W fully VMEM-resident -- single grid axis over batch tiles.
# ---------------------------------------------------------------------------
def _lr_kernel_resident(x_ref, w_ref, b_ref, o_ref):
    # bf16 MXU matmul with f32 accumulation; bias + sigmoid in f32.
    logits = jnp.dot(x_ref[...], w_ref[...], preferred_element_type=jnp.float32)
    logits = logits + b_ref[...]                     # broadcast (1, N) over (tm, N)
    o_ref[...] = jax.nn.sigmoid(logits).astype(o_ref.dtype)


# ---------------------------------------------------------------------------
# Kernel 2: K-tiled fallback for very large input_dim (W does not fit VMEM).
# ---------------------------------------------------------------------------
def _lr_kernel_ktiled(x_ref, w_ref, b_ref, o_ref, acc_ref):
    k = pl.program_id(1)

    @pl.when(k == 0)
    def _():
        # Fold the bias into the accumulator init (saves a VPU add at finalize).
        acc_ref[...] = jnp.broadcast_to(b_ref[...], acc_ref.shape).astype(jnp.float32)

    acc_ref[...] += jnp.dot(x_ref[...], w_ref[...], preferred_element_type=jnp.float32)

    @pl.when(k == pl.num_programs(1) - 1)
    def _():
        o_ref[...] = jax.nn.sigmoid(acc_ref[...]).astype(o_ref.dtype)


def stackoverflow_logistic_regression(x, w_t, b, *, compute_dtype=jnp.bfloat16):
    """sigmoid(x @ w_t + b).

    x:   (B, K) float  -- batch of inputs.
    w_t: (K, N) float  -- Linear weight, already transposed to (input_dim, output_dim).
    b:   (N,) or (1, N) float -- bias.
    """
    B, K = x.shape
    K2, N = w_t.shape
    assert K == K2
    b = jnp.reshape(b, (1, N))
    out_dtype = x.dtype
    itemsize = jnp.dtype(compute_dtype).itemsize

    # --- TPU-friendly padded shapes ---------------------------------------
    Np = _round_up(N, 128)          # lane-dense output stores
    Kp = _round_up(K, 128)          # aligned contraction dim
    Bp8 = _round_up(B, 8)

    # Batch tile: big enough to fill MXU rows / amortize the ~600-cycle grid
    # step cost, but budgeted so the double-buffered x tile stays ~<= 8 MiB.
    tm_budget = max(8, (8 * _MiB // (2 * Kp * itemsize)) // 8 * 8)
    tm = min(256, Bp8, tm_budget)
    # If that leaves a single grid step and there is room to split, halve tm so
    # the "parallel" batch axis can shard across v7x's two TensorCores.
    if Bp8 // tm <= 1 and Bp8 >= 16:
        tm = max(8, _round_up(Bp8 // 2, 8))
    Bp = _round_up(Bp8, tm)

    # --- pad inputs (zeros in K contribute nothing; extra rows/cols sliced) --
    xd = x.astype(compute_dtype)
    wd = w_t.astype(compute_dtype)
    if (Bp, Kp) != (B, K):
        xd = jnp.pad(xd, ((0, Bp - B), (0, Kp - K)))
    if (Kp, Np) != (K, N):
        wd = jnp.pad(wd, ((0, Kp - K), (0, Np - N)))
    bf = b.astype(jnp.float32)
    if Np != N:
        bf = jnp.pad(bf, ((0, 0), (0, Np - N)))

    out_itemsize = jnp.dtype(out_dtype).itemsize
    w_bytes = Kp * Np * itemsize
    o_tile_bytes = tm * Np * out_itemsize

    if w_bytes <= _RESIDENT_W_CAP:
        # ------------- resident-W path: no K axis, no accumulator -----------
        x_tile_bytes = tm * Kp * itemsize
        vmem_needed = w_bytes + 2 * (x_tile_bytes + o_tile_bytes) + Np * 4
        vmem_limit = max(32 * _MiB, min(int(vmem_needed * 1.5) + 2 * _MiB, _VMEM_LIMIT_CAP))

        out = pl.pallas_call(
            _lr_kernel_resident,
            out_shape=jax.ShapeDtypeStruct((Bp, Np), out_dtype),
            grid_spec=pltpu.PrefetchScalarGridSpec(
                num_scalar_prefetch=0,
                grid=(Bp // tm,),
                in_specs=[
                    pl.BlockSpec((tm, Kp), lambda i: (i, 0)),   # x tile
                    pl.BlockSpec((Kp, Np), lambda i: (0, 0)),   # W (VMEM-resident)
                    pl.BlockSpec((1, Np), lambda i: (0, 0)),    # bias (resident)
                ],
                out_specs=pl.BlockSpec((tm, Np), lambda i: (i, 0)),
            ),
            compiler_params=pltpu.CompilerParams(
                dimension_semantics=("parallel",),
                vmem_limit_bytes=vmem_limit,
            ),
        )(xd, wd, bf)
    else:
        # ------------- K-tiled fallback for very large input_dim ------------
        tk = 2048
        while Kp % tk != 0:
            tk //= 2                                  # Kp % 128 == 0 -> terminates
        x_tile_bytes = tm * tk * itemsize
        w_tile_bytes = tk * Np * itemsize
        acc_bytes = tm * Np * 4
        vmem_needed = 2 * (x_tile_bytes + w_tile_bytes + o_tile_bytes) + acc_bytes + Np * 4
        vmem_limit = max(32 * _MiB, min(int(vmem_needed * 1.5) + 2 * _MiB, _VMEM_LIMIT_CAP))

        out = pl.pallas_call(
            _lr_kernel_ktiled,
            out_shape=jax.ShapeDtypeStruct((Bp, Np), out_dtype),
            grid_spec=pltpu.PrefetchScalarGridSpec(
                num_scalar_prefetch=0,
                grid=(Bp // tm, Kp // tk),
                in_specs=[
                    pl.BlockSpec((tm, tk), lambda i, k: (i, k)),   # x tile
                    pl.BlockSpec((tk, Np), lambda i, k: (k, 0)),   # W tile (full N)
                    pl.BlockSpec((1, Np), lambda i, k: (0, 0)),    # bias (resident)
                ],
                out_specs=pl.BlockSpec((tm, Np), lambda i, k: (i, 0)),
                scratch_shapes=[pltpu.VMEM((tm, Np), jnp.float32)],
            ),
            compiler_params=pltpu.CompilerParams(
                dimension_semantics=("parallel", "arbitrary"),
                vmem_limit_bytes=vmem_limit,
            ),
        )(xd, wd, bf)

    return out[:B, :N]


def _reference_f32(x, w_t, b):
    return jax.nn.sigmoid(x @ w_t + jnp.reshape(b, (1, -1)))


def _reference_bf16(x, w_t, b):
    logits = jnp.dot(
        x.astype(jnp.bfloat16), w_t.astype(jnp.bfloat16),
        preferred_element_type=jnp.float32,
    ) + jnp.reshape(b, (1, -1)).astype(jnp.float32)
    return jax.nn.sigmoid(logits)


if __name__ == "__main__":
    # Small shapes consistent with the module: batch=8, input_dim=256, output_dim=128.
    batch, input_dim, output_dim = 8, 256, 128

    key = jax.random.PRNGKey(0)
    kx, kw, kb = jax.random.split(key, 3)

    # nn.Linear default init: U(-1/sqrt(K), 1/sqrt(K)).
    bound = 1.0 / (input_dim ** 0.5)
    w_t = jax.random.uniform(kw, (input_dim, output_dim), jnp.float32, -bound, bound)
    b = jax.random.uniform(kb, (output_dim,), jnp.float32, -bound, bound)
    x = jax.random.normal(kx, (batch, input_dim), jnp.float32)

    out = jax.block_until_ready(stackoverflow_logistic_regression(x, w_t, b))
    assert out.shape == (batch, output_dim)
    assert jnp.allclose(out, _reference_bf16(x, w_t, b), atol=2e-3, rtol=0), \
        "mismatch vs bf16-compute reference"
    assert jnp.allclose(out, _reference_f32(x, w_t, b), atol=2e-2, rtol=0), \
        "mismatch vs f32 reference"

    # Unaligned shapes exercise the padding / slicing path.
    batch2, in2, out2 = 5, 100, 50
    k2x, k2w, k2b = jax.random.split(jax.random.PRNGKey(1), 3)
    bound2 = 1.0 / (in2 ** 0.5)
    w2 = jax.random.uniform(k2w, (in2, out2), jnp.float32, -bound2, bound2)
    b2 = jax.random.uniform(k2b, (out2,), jnp.float32, -bound2, bound2)
    x2 = jax.random.normal(k2x, (batch2, in2), jnp.float32)

    out_2 = jax.block_until_ready(stackoverflow_logistic_regression(x2, w2, b2))
    assert out_2.shape == (batch2, out2)
    assert jnp.allclose(out_2, _reference_f32(x2, w2, b2), atol=2e-2, rtol=0), \
        "mismatch vs f32 reference (unaligned shapes)"

    print("KERNEL_OK")
</pallas_src>

<mosaic_0001>
module attributes {stable_mosaic.version = 11 : i64} {
  func.func @_lr_kernel_resident(%arg0: i32, %arg1: memref<8x256xbf16, #tpu.memory_space<vmem>>, %arg2: memref<256x128xbf16, #tpu.memory_space<vmem>>, %arg3: memref<1x128xf32, #tpu.memory_space<vmem>>, %arg4: memref<8x128xf32, #tpu.memory_space<vmem>>) attributes {dimension_semantics = [#tpu.dimension_semantics<parallel>], iteration_bounds = array<i64: 1>, scalar_prefetch = 0 : i64, scratch_operands = 0 : i64, tpu.core_type = #tpu.core_type<tc>, window_params = [{transform_indices = @transform_0, window_bounds = array<i64: 8, 256>}, {pipeline_mode = #tpu.pipeline_mode<synchronous>, transform_indices = @transform_1, window_bounds = array<i64: 256, 128>}, {pipeline_mode = #tpu.pipeline_mode<synchronous>, transform_indices = @transform_2, window_bounds = array<i64: 1, 128>}, {transform_indices = @transform_3, window_bounds = array<i64: 8, 128>}]} {
    %c0 = arith.constant 0 : index
    %c0_0 = arith.constant 0 : index
    %0 = vector.load %arg1[%c0, %c0_0] : memref<8x256xbf16, #tpu.memory_space<vmem>>, vector<8x256xbf16>
    %c0_1 = arith.constant 0 : index
    %c0_2 = arith.constant 0 : index
    %1 = vector.load %arg2[%c0_1, %c0_2] : memref<256x128xbf16, #tpu.memory_space<vmem>>, vector<256x128xbf16>
    %cst = arith.constant dense<0.000000e+00> : vector<8x128xf32>
    %2 = tpu.matmul %0, %1, %cst {dimension_numbers = #tpu.dot_dimension_numbers<[1], [0], [0], [1], [0, 0, 1, 1], [], []>} : vector<8x256xbf16>, vector<256x128xbf16>, vector<8x128xf32> -> vector<8x128xf32>
    %c0_3 = arith.constant 0 : index
    %c0_4 = arith.constant 0 : index
    %3 = vector.load %arg3[%c0_3, %c0_4] : memref<1x128xf32, #tpu.memory_space<vmem>>, vector<1x128xf32>
    %4 = vector.broadcast %3 : vector<1x128xf32> to vector<8x128xf32>
    %5 = arith.addf %2, %4 : vector<8x128xf32>
    %6 = arith.negf %5 : vector<8x128xf32>
    %7 = math.exp %6 : vector<8x128xf32>
    %cst_5 = arith.constant 1.000000e+00 : f32
    %8 = vector.broadcast %cst_5 : f32 to vector<8x128xf32>
    %9 = arith.addf %8, %7 : vector<8x128xf32>
    %10 = arith.divf %8, %9 : vector<8x128xf32>
    %c0_6 = arith.constant 0 : index
    %c0_7 = arith.constant 0 : index
    %11 = vector.load %arg4[%c0_6, %c0_7] : memref<8x128xf32, #tpu.memory_space<vmem>>, vector<8x128xf32>
    tpu.vector_store %arg4[%c0_6, %c0_7], %10 {strides = array<i32>} : memref<8x128xf32, #tpu.memory_space<vmem>>, vector<8x128xf32>,
    return
  }
  func.func @transform_0(%arg0: i32) -> (i32, i32) {
    %c0_i32 = arith.constant 0 : i32
    %c0_i32_0 = arith.constant 0 : i32
    return %arg0, %c0_i32 : i32, i32
  }
  func.func @transform_1(%arg0: i32) -> (i32, i32) {
    %c0_i32 = arith.constant 0 : i32
    %c0_i32_0 = arith.constant 0 : i32
    %c0_i32_1 = arith.constant 0 : i32
    return %c0_i32, %c0_i32_0 : i32, i32
  }
  func.func @transform_2(%arg0: i32) -> (i32, i32) {
    %c0_i32 = arith.constant 0 : i32
    %c0_i32_0 = arith.constant 0 : i32
    %c0_i32_1 = arith.constant 0 : i32
    return %c0_i32, %c0_i32_0 : i32, i32
  }
  func.func @transform_3(%arg0: i32) -> (i32, i32) {
    %c0_i32 = arith.constant 0 : i32
    %c0_i32_0 = arith.constant 0 : i32
    return %arg0, %c0_i32 : i32, i32
  }
}

</mosaic_0001>

<bundles_post_ra>
// kernel: tpu_custom_call.1
= control target key start
LH: loop header
LB: loop body
LE: loop exit
PB: predicated region body
PF: predicated region fallthrough
CT: control target
= control target key end

     0   :  { %8 = vsyncpa [#allocation3], 0  ;;  %s455_s0 = inlined_call_operand.hbm [shape: bf16[8,256], index: 0, kind: input, shape index: {}]   ;;  %s456_s1 = inlined_call_operand.hbm [shape: bf16[256,128], index: 1, kind: input, shape index: {}]   ;;  %s457_s2 = inlined_call_operand.vmem [shape: f32[1,128], index: 2, kind: input, shape index: {}]   ;;  %s458_s3 = inlined_call_operand.hbm [shape: f32[8,128], index: 3, kind: output, shape index: {}]  }
   0x1   :  { %9 = vsyncpa [#allocation6], 0 }
   0x2   :  { %10 = vsyncpa [#allocation4], 0  ;;  %s16_s14 = sshll.u32 %s455_s0, 4  ;;  %s418_s15 = smov [#allocation2]   ;;  %s17_s14 = int_to_ptr.hbm [resolvable:$true] %s16_s14 }
   0x3   :  { %s18_s16 = sshll.u32 %s418_s15, 4  ;;  %s26_s19 = sshll.u32 %s456_s1, 4  ;;  %s19_s16 = int_to_ptr.vmem [resolvable:$true] %s18_s16  ;;  %s27_s19 = int_to_ptr.hbm [resolvable:$true] %s26_s19 }
   0x4   :  { %21 = dma.hbm_to_vmem [thread:$0]  %s17_s14, 128, %s19_s16, [#allocation3]  }
   0x5   :  { %s419_s20 = smov [#allocation5]   ;;  %s420_s22 = smov 64  }
   0x6   :  { %s28_s21 = sshll.u32 %s419_s20, 4  ;;  %s421_s23 = smov 4   ;;  %s29_s21 = int_to_ptr.vmem [resolvable:$true] %s28_s21 }
   0x7   :  { %34 = dma.hbm_to_vmem [thread:$0]  %s27_s19, 2048, %s29_s21, [#allocation6], %s420_s22, %s420_s22, %s421_s23  }
   0x8   :  { %412 = dma.done.wait [#allocation3], 128  }
   0x9   :  { %413 = vsyncadd [#allocation3], 4294967168 }
   0xa   :  { %414 = dma.done.wait [#allocation6], 2048  }
   0xb   :  { %415 = vsyncadd [#allocation6], 4294965248  ;;  %v321_v0 = vld [vmem:[#allocation5 + $0x38] sm:$0xff]  ;;  %v320_v2 = vld [vmem:[#allocation5 + $0x30] sm:$0xff]  ;;  %s422_s24 = smov [#allocation7]   ;;  %s238_s27 = sshll.u32 %s458_s3, 4  ;;  %s239_s27 = int_to_ptr.hbm [resolvable:$true] %s238_s27 }
   0xc   :  { %v329_v1 = vld [vmem:[#allocation5 + $0x78] sm:$0xff]  ;;  %185 = vmatpush.bf16.msra.mxu0 %v321_v0  ;;  %v328_v3 = vld [vmem:[#allocation5 + $0x70] sm:$0xff]  ;;  %v319_v4 = vld [vmem:[#allocation5 + $0x28] sm:$0xff] }
   0xd   :  { %198 = vmatpush.bf16.msra.mxu1 %v329_v1  ;;  %v327_v5 = vld [vmem:[#allocation5 + $0x68] sm:$0xff]  ;;  %v318_v6 = vld [vmem:[#allocation5 + $0x20] sm:$0xff]  ;;  %v317_v8 = vld [vmem:[#allocation5 + $0x18] sm:$0xff] }
   0xe   :  { %v326_v7 = vld [vmem:[#allocation5 + $0x60] sm:$0xff]  ;;  %v325_v9 = vld [vmem:[#allocation5 + $0x58] sm:$0xff]  ;;  %v316_v10 = vld [vmem:[#allocation5 + $0x10] sm:$0xff] }
   0xf   :  { %v324_v11 = vld [vmem:[#allocation5 + $0x50] sm:$0xff]  ;;  %v315_v12 = vld [vmem:[#allocation5 + $0x8] sm:$0xff]  ;;  %v45_v14 = vld [vmem:[#allocation2] sm:$0xff] }
  0x10   :  { %186 = vmatpush.bf16.msra.mxu0 %v320_v2  ;;  %v323_v13 = vld [vmem:[#allocation5 + $0x48] sm:$0xff]  ;;  %v83_v15 = vunpack.c.l.b16 %v45_v14  ;;  %v84_v16 = vunpack.c.h.b16 %v45_v14  ;;  %v314_v17 = vld [vmem:[#allocation5] sm:$0xff]  ;;  %v335_v21 = vld [vmem:[%s457_s2] ss:$0 sm:$0xff]  ;;  %s236_s2 = sshll.u32 %s422_s24, 4  ;;  %s237_s2 = int_to_ptr.vmem [resolvable:$true] %s236_s2 }
  0x11   :  { %199 = vmatpush.bf16.msra.mxu1 %v328_v3  ;;  %v322_v18 = vld [vmem:[#allocation5 + $0x40] sm:$0xff] }
  0x12   :  { %v85_v19 = vpack.c.b16 %v83_v15, %v83_v15  ;;  %v86_v20 = vpack.c.b16 %v84_v16, %v84_v16 }
  0x14   :  { %187 = vmatpush.bf16.msra.mxu0 %v319_v4 }
  0x15   :  { %200 = vmatpush.bf16.msra.mxu1 %v327_v5 }
  0x18   :  { %188 = vmatpush.bf16.msra.mxu0 %v318_v6 }
  0x19   :  { %201 = vmatpush.bf16.msra.mxu1 %v326_v7 }
  0x1c   :  { %189 = vmatpush.bf16.msra.mxu0 %v317_v8 }
  0x1d   :  { %202 = vmatpush.bf16.msra.mxu1 %v325_v9 }
  0x20   :  { %190 = vmatpush.bf16.msra.mxu0 %v316_v10 }
  0x21   :  { %203 = vmatpush.bf16.msra.mxu1 %v324_v11 }
  0x24   :  { %191 = vmatpush.bf16.msra.mxu0 %v315_v12 }
  0x25   :  { %204 = vmatpush.bf16.msra.mxu1 %v323_v13 }
  0x28   :  { %192 = vmatpush.bf16.msra.mxu0 %v314_v17 }
  0x29   :  { %205 = vmatpush.bf16.msra.mxu1 %v322_v18 }
  0x2b   :  { %193 = vmatmul.bf16.vlgmr.msra.gmra.mxu0 %v85_v19 }
  0x2c   :  { %206 = vmatmul.bf16.vlgmr.msra.gmra.mxu1 %v86_v20 }
  0xa8   :  { %v194_v22 = vpop.f32.mrf.mxu0 }
  0xa9   :  { %v207_v23 = vpop.f32.mrf.mxu1  ;;  %v195_v24 = vadd.f32 %v335_v21, %v194_v22 }
  0xab   :  { %v208_v25 = vadd.f32 %v207_v23, %v195_v24 }
  0xad   :  { %v313_v26 = vmul.f32 -1.442695, %v208_v25 }
  0xaf   :  { %336 = vpow2.f32 %v313_v26 }
  0xb0   :  { %v196_v27 = vpop.f32.mrf.mxu0 }
  0xb1   :  { %v209_v28 = vpop.f32.mrf.mxu1 }
  0xb5   :  { %v337_v29 = vpop.eup %336 }
  0xb6   :  { %v214_v30 = vadd.f32 1.0, %v337_v29 }
  0xb8   :  { %338 = vrcp.f32 %v214_v30  ;;  %v226_v34 = vand.u32 2147483648, %v214_v30  ;;  %v224_v36 = vand.u32 2147483647, %v214_v30  ;;  %vm220_vm1 = vweird.f32 %v214_v30 }
  0xba   :  { %v227_v38 = vor.u32 1.1754944e-38, %v226_v34  ;;  %vm225_vm3 = vcmp.eq.f32.partialorder %v224_v36, 8.507059e+37 }
  0xbe   :  { %v339_v31 = vpop.eup %338 }
  0xbf   :  { %v216_v32 = vmul.f32 %v339_v31, %v214_v30  ;;  %vm221_vm0 = vweird.f32 %v339_v31 }
  0xc0   :  { %vm222_vm2 = vmor %vm220_vm1, %vm221_vm0 }
  0xc1   :  { %v217_v33 = vsub.f32 1.0, %v216_v32 }
  0xc3   :  { %v218_v35 = vmul.f32 %v339_v31, %v217_v33 }
  0xc5   :  { %v219_v37 = vadd.f32 %v339_v31, %v218_v35 }
  0xc7   :  { %v223_v39 = vsel %vm222_vm2, %v339_v31, %v219_v37 }
  0xc8   :  { %v228_v40 = vsel %vm225_vm3, %v227_v38, %v223_v39 }
  0xc9   :  { %230 = vst [vmem:[#allocation7] sm:$0xff] %v228_v40 }
  0xca   :  { %241 = dma.vmem_to_hbm [thread:$0]  %s237_s2, 128, %s239_s27, [#allocation4]  }
  0xcb   :  { %416 = dma.done.wait [#allocation4], 128  }
  0xcc   :  { %417 = vsyncadd [#allocation4], 4294967168 }
  0xcd   :  { %246 = vsyncpa [#allocation3], 1 }
  0xce   :  { %247 = vsyncpa [#allocation6], 1 }
  0xcf   :  { %248 = vsyncpa [#allocation4], 1 }

</bundles_post_ra>
